<compile_context>
chip_gen: v6e
topology: v6e:2x2x1
jax: 0.10.0
libtpu: 0.0.40
codegen_flags: <defaults>
</compile_context>

<pallas_src>
import jax
import jax.numpy as jnp
from jax.experimental import pallas as pl
from jax.experimental.pallas import tpu as pltpu

EPS = 1e-5          # nn.LayerNorm default eps
NEG_SLOPE = 0.01    # nn.LeakyReLU default negative_slope


def _layernorm(x, g, b):
    mu = jnp.mean(x, axis=-1, keepdims=True)
    var = jnp.mean((x - mu) ** 2, axis=-1, keepdims=True)
    return (x - mu) * jax.lax.rsqrt(var + EPS) * g + b


def _leaky_relu(x):
    return jnp.where(x >= 0, x, NEG_SLOPE * x)


def _resident(shape):
    """BlockSpec for a weight: full array, block index fixed -> VMEM-resident."""
    nd = len(shape)
    return pl.BlockSpec(shape, lambda *_: (0,) * nd)


# --------------------------- fused decoder kernel ----------------------------
def _decoder_kernel(x_ref, pos_ref, g1_ref, b1_ref, wq_ref, wk_ref, wv_ref,
                    wp_ref, bp_ref, g2_ref, b2_ref, w1_ref, bb1_ref,
                    w2_ref, bb2_ref, o_ref):
    TN, L, D = x_ref.shape
    T = TN * L
    f32, bf16 = jnp.float32, jnp.bfloat16

    # pos-emb add (pos broadcasts over the batch tile) + LayerNorm1, in f32
    x = x_ref[...].astype(f32) + pos_ref[...]
    x = _layernorm(x, g1_ref[...], b1_ref[...])                    # (TN, L, D)

    # token-major 2-D view; L == 8 == sublane tile, so this reshape is a no-op
    xt = x.reshape(T, D).astype(bf16)

    # Q / K / V projections (bias-free); separate lane-aligned matmuls
    q = jnp.dot(xt, wq_ref[...], preferred_element_type=f32).reshape(TN, L, D)
    k = jnp.dot(xt, wk_ref[...], preferred_element_type=f32).reshape(TN, L, D)
    v = jnp.dot(xt, wv_ref[...], preferred_element_type=f32).reshape(TN, L, D)

    # single-head attention; no 1/sqrt(d) scaling (matches the PyTorch module)
    s = jnp.einsum('nqd,nkd->nqk', q.astype(bf16), k.astype(bf16),
                   preferred_element_type=f32)                     # (TN, L, L)
    s = s - jnp.max(s, axis=-1, keepdims=True)
    p = jnp.exp(s)
    p = p * pl.reciprocal(jnp.sum(p, axis=-1, keepdims=True), approx=False)
    y = jnp.einsum('nqk,nkd->nqd', p.astype(bf16), v.astype(bf16),
                   preferred_element_type=f32)                     # (TN, L, D)

    # proj (+bias) -> LayerNorm2 -> Mlp (fc1 -> LeakyReLU -> fc2)
    yt = y.reshape(T, D)
    yt = jnp.dot(yt.astype(bf16), wp_ref[...],
                 preferred_element_type=f32) + bp_ref[...]
    yt = _layernorm(yt, g2_ref[...], b2_ref[...])
    h = _leaky_relu(jnp.dot(yt.astype(bf16), w1_ref[...],
                            preferred_element_type=f32) + bb1_ref[...])
    # final projection kept in f32: (H x 2) is MXU-trivial and sets output precision
    o = jnp.dot(h, w2_ref[...], preferred_element_type=f32) + bb2_ref[...]   # (T, 2)
    o_ref[...] = o.reshape(TN, L, o.shape[-1]).astype(o_ref.dtype)


def transformer_decoder(x, params, tile_n=64):
    """x: (N, L, D) noise_input -> (N, L, 2)."""
    N, L, D = x.shape
    H = params['fc1_w'].shape[1]
    OUT = params['fc2_w'].shape[1]
    tile_n = max(1, min(tile_n, N))
    grid = (pl.cdiv(N, tile_n),)

    weights = [
        params['pos'],                                    # (L, D)
        params['g1'].reshape(1, D), params['b1'].reshape(1, D),
        params['wq'], params['wk'], params['wv'],         # (D, D) bf16, bias-free
        params['proj_w'], params['proj_b'].reshape(1, D),
        params['g2'].reshape(1, D), params['b2'].reshape(1, D),
        params['fc1_w'], params['fc1_b'].reshape(1, H),
        params['fc2_w'], params['fc2_b'].reshape(1, OUT),
    ]

    # advisory cost estimate for the XLA scheduler
    flops = int(N * L * (2 * D * (3 * D) + 2 * D * D + 2 * D * H + 2 * H * OUT)
                + N * (2 * 2 * L * L * D))
    transcendentals = int(N * L * L + 4 * N * L)
    bytes_accessed = int(x.size * x.dtype.itemsize + N * L * OUT * 4
                         + sum(w.size * w.dtype.itemsize for w in weights))

    return pl.pallas_call(
        _decoder_kernel,
        out_shape=jax.ShapeDtypeStruct((N, L, OUT), jnp.float32),
        grid=grid,
        in_specs=[pl.BlockSpec((tile_n, L, D), lambda i: (i, 0, 0))]
                 + [_resident(w.shape) for w in weights],
        out_specs=pl.BlockSpec((tile_n, L, OUT), lambda i: (i, 0, 0)),
        compiler_params=pltpu.CompilerParams(
            dimension_semantics=("parallel",)),
        cost_estimate=pl.CostEstimate(flops=flops,
                                      transcendentals=transcendentals,
                                      bytes_accessed=bytes_accessed),
    )(x, *weights)


# ------------------------------- parameters ----------------------------------
def init_params(key, L, D, H, out_dim=2):
    ks = iter(jax.random.split(key, 16))

    def w(shape, scale=0.1):
        return jax.random.normal(next(ks), shape, jnp.float32) * scale

    p = {}
    # TODO(synk): trunc_normal_ init approximated with plain normal (init only).
    p['pos'] = w((L, D), 0.02)                    # pos_emb (std=0.02)
    p['g1'] = jnp.ones((D,), jnp.float32); p['b1'] = jnp.zeros((D,), jnp.float32)
    p['q_w'] = w((D, D))                          # Linear(D, D, bias=False), (in,out)
    p['kv_w'] = w((D, 2 * D))                     # Linear(D, 2D, bias=False), (in,out)
    p['proj_w'] = w((D, D)); p['proj_b'] = w((D,), 0.05)
    p['g2'] = jnp.ones((D,), jnp.float32); p['b2'] = jnp.zeros((D,), jnp.float32)
    p['fc1_w'] = w((D, H)); p['fc1_b'] = w((H,), 0.05)
    p['fc2_w'] = w((H, out_dim)); p['fc2_b'] = w((out_dim,), 0.05)
    return p


def prepare_params(p):
    """One-time weight prep: split kv, cast matmul weights to bf16."""
    q = dict(p)
    D = p['q_w'].shape[0]
    bf16 = jnp.bfloat16
    q['wq'] = p['q_w'].astype(bf16)
    q['wk'] = p['kv_w'][:, :D].astype(bf16)
    q['wv'] = p['kv_w'][:, D:].astype(bf16)
    q['proj_w'] = p['proj_w'].astype(bf16)
    q['fc1_w'] = p['fc1_w'].astype(bf16)
    # fc2 / biases / LayerNorm params stay f32 (tiny; preserve output precision)
    return q


# --------------------------- pure-JAX reference -------------------------------
def decoder_ref(p, x):
    D = x.shape[-1]
    x = x + p['pos']
    x = _layernorm(x, p['g1'], p['b1'])
    q = x @ p['q_w']
    kv = x @ p['kv_w']
    k, v = kv[..., :D], kv[..., D:]
    attn = jnp.einsum('bqd,bkd->bqk', q, k)
    attn = jax.nn.softmax(attn, axis=-1)
    y = jnp.einsum('bqk,bkd->bqd', attn, v)
    y = y @ p['proj_w'] + p['proj_b']
    y = _layernorm(y, p['g2'], p['b2'])
    h = _leaky_relu(y @ p['fc1_w'] + p['fc1_b'])
    return h @ p['fc2_w'] + p['fc2_b']


if __name__ == "__main__":
    # small shapes consistent with the module
    N = 8      # batch (pedestrians)
    L = 8      # obs_len
    D = 32     # input_dim
    H = 64     # mlp_hid_dim

    key = jax.random.PRNGKey(0)
    kp, kx = jax.random.split(key)
    params = init_params(kp, L, D, H)
    pparams = prepare_params(params)
    noise_input = jax.random.normal(kx, (N, L, D), jnp.float32)

    # tile_n=4 -> grid=(2,): exercises the tiled, double-buffered, parallel grid
    out = transformer_decoder(noise_input, pparams, tile_n=4)
    out = jax.block_until_ready(out)

    assert out.shape == (N, L, 2), out.shape
    assert bool(jnp.all(jnp.isfinite(out)))

    ref = decoder_ref(params, noise_input)
    max_err = float(jnp.max(jnp.abs(out - ref)))
    # bf16 MXU operands (f32 accumulation) vs a pure-f32 reference
    assert max_err < 3e-2, f"max abs error vs reference: {max_err}"

    print("KERNEL_OK")
</pallas_src>

<mosaic_0001>
module attributes {stable_mosaic.version = 11 : i64} {
  func.func @_decoder_kernel(%arg0: i32, %arg1: memref<4x8x32xf32, #tpu.memory_space<vmem>>, %arg2: memref<8x32xf32, #tpu.memory_space<vmem>>, %arg3: memref<1x32xf32, #tpu.memory_space<vmem>>, %arg4: memref<1x32xf32, #tpu.memory_space<vmem>>, %arg5: memref<32x32xbf16, #tpu.memory_space<vmem>>, %arg6: memref<32x32xbf16, #tpu.memory_space<vmem>>, %arg7: memref<32x32xbf16, #tpu.memory_space<vmem>>, %arg8: memref<32x32xbf16, #tpu.memory_space<vmem>>, %arg9: memref<1x32xf32, #tpu.memory_space<vmem>>, %arg10: memref<1x32xf32, #tpu.memory_space<vmem>>, %arg11: memref<1x32xf32, #tpu.memory_space<vmem>>, %arg12: memref<32x64xbf16, #tpu.memory_space<vmem>>, %arg13: memref<1x64xf32, #tpu.memory_space<vmem>>, %arg14: memref<64x2xf32, #tpu.memory_space<vmem>>, %arg15: memref<1x2xf32, #tpu.memory_space<vmem>>, %arg16: memref<4x8x2xf32, #tpu.memory_space<vmem>>) attributes {dimension_semantics = [#tpu.dimension_semantics<parallel>], iteration_bounds = array<i64: 2>, scalar_prefetch = 0 : i64, scratch_operands = 0 : i64, tpu.core_type = #tpu.core_type<tc>, window_params = [{transform_indices = @transform_0, window_bounds = array<i64: 4, 8, 32>}, {pipeline_mode = #tpu.pipeline_mode<synchronous>, transform_indices = @transform_1, window_bounds = array<i64: 8, 32>}, {pipeline_mode = #tpu.pipeline_mode<synchronous>, transform_indices = @transform_2, window_bounds = array<i64: 1, 32>}, {pipeline_mode = #tpu.pipeline_mode<synchronous>, transform_indices = @transform_3, window_bounds = array<i64: 1, 32>}, {pipeline_mode = #tpu.pipeline_mode<synchronous>, transform_indices = @transform_4, window_bounds = array<i64: 32, 32>}, {pipeline_mode = #tpu.pipeline_mode<synchronous>, transform_indices = @transform_5, window_bounds = array<i64: 32, 32>}, {pipeline_mode = #tpu.pipeline_mode<synchronous>, transform_indices = @transform_6, window_bounds = array<i64: 32, 32>}, {pipeline_mode = #tpu.pipeline_mode<synchronous>, transform_indices = @transform_7, window_bounds = array<i64: 32, 32>}, {pipeline_mode = #tpu.pipeline_mode<synchronous>, transform_indices = @transform_8, window_bounds = array<i64: 1, 32>}, {pipeline_mode = #tpu.pipeline_mode<synchronous>, transform_indices = @transform_9, window_bounds = array<i64: 1, 32>}, {pipeline_mode = #tpu.pipeline_mode<synchronous>, transform_indices = @transform_10, window_bounds = array<i64: 1, 32>}, {pipeline_mode = #tpu.pipeline_mode<synchronous>, transform_indices = @transform_11, window_bounds = array<i64: 32, 64>}, {pipeline_mode = #tpu.pipeline_mode<synchronous>, transform_indices = @transform_12, window_bounds = array<i64: 1, 64>}, {pipeline_mode = #tpu.pipeline_mode<synchronous>, transform_indices = @transform_13, window_bounds = array<i64: 64, 2>}, {pipeline_mode = #tpu.pipeline_mode<synchronous>, transform_indices = @transform_14, window_bounds = array<i64: 1, 2>}, {transform_indices = @transform_15, window_bounds = array<i64: 4, 8, 2>}]} {
    %c0 = arith.constant 0 : index
    %c0_0 = arith.constant 0 : index
    %c0_1 = arith.constant 0 : index
    %0 = vector.load %arg1[%c0, %c0_0, %c0_1] : memref<4x8x32xf32, #tpu.memory_space<vmem>>, vector<4x8x32xf32>
    %c0_2 = arith.constant 0 : index
    %c0_3 = arith.constant 0 : index
    %1 = vector.load %arg2[%c0_2, %c0_3] : memref<8x32xf32, #tpu.memory_space<vmem>>, vector<8x32xf32>
    %2 = vector.shape_cast %1 : vector<8x32xf32> to vector<1x8x32xf32>
    %3 = vector.broadcast %2 : vector<1x8x32xf32> to vector<4x8x32xf32>
    %4 = arith.addf %0, %3 : vector<4x8x32xf32>
    %c0_4 = arith.constant 0 : index
    %c0_5 = arith.constant 0 : index
    %5 = vector.load %arg3[%c0_4, %c0_5] : memref<1x32xf32, #tpu.memory_space<vmem>>, vector<1x32xf32>
    %c0_6 = arith.constant 0 : index
    %c0_7 = arith.constant 0 : index
    %6 = vector.load %arg4[%c0_6, %c0_7] : memref<1x32xf32, #tpu.memory_space<vmem>>, vector<1x32xf32>
    %cst = arith.constant dense<0.000000e+00> : vector<4x8xf32>
    %7 = vector.multi_reduction <add>, %4, %cst [2] : vector<4x8x32xf32> to vector<4x8xf32>
    %8 = vector.shape_cast %7 : vector<4x8xf32> to vector<4x8x1xf32>
    %cst_8 = arith.constant 3.200000e+01 : f32
    %9 = vector.broadcast %cst_8 : f32 to vector<4x8x1xf32>
    %10 = arith.divf %8, %9 : vector<4x8x1xf32>
    %11 = vector.broadcast %10 : vector<4x8x1xf32> to vector<4x8x32xf32>
    %12 = arith.subf %4, %11 : vector<4x8x32xf32>
    %13 = arith.mulf %12, %12 : vector<4x8x32xf32>
    %cst_9 = arith.constant dense<0.000000e+00> : vector<4x8xf32>
    %14 = vector.multi_reduction <add>, %13, %cst_9 [2] : vector<4x8x32xf32> to vector<4x8xf32>
    %15 = vector.shape_cast %14 : vector<4x8xf32> to vector<4x8x1xf32>
    %cst_10 = arith.constant 3.200000e+01 : f32
    %16 = vector.broadcast %cst_10 : f32 to vector<4x8x1xf32>
    %17 = arith.divf %15, %16 : vector<4x8x1xf32>
    %18 = vector.broadcast %10 : vector<4x8x1xf32> to vector<4x8x32xf32>
    %19 = arith.subf %4, %18 : vector<4x8x32xf32>
    %cst_11 = arith.constant 9.99999974E-6 : f32
    %20 = vector.broadcast %cst_11 : f32 to vector<4x8x1xf32>
    %21 = arith.addf %17, %20 : vector<4x8x1xf32>
    %22 = math.rsqrt %21 : vector<4x8x1xf32>
    %23 = vector.broadcast %22 : vector<4x8x1xf32> to vector<4x8x32xf32>
    %24 = arith.mulf %19, %23 : vector<4x8x32xf32>
    %25 = vector.shape_cast %5 : vector<1x32xf32> to vector<1x1x32xf32>
    %26 = vector.broadcast %25 : vector<1x1x32xf32> to vector<4x8x32xf32>
    %27 = arith.mulf %24, %26 : vector<4x8x32xf32>
    %28 = vector.shape_cast %6 : vector<1x32xf32> to vector<1x1x32xf32>
    %29 = vector.broadcast %28 : vector<1x1x32xf32> to vector<4x8x32xf32>
    %30 = arith.addf %27, %29 : vector<4x8x32xf32>
    %31 = vector.shape_cast %30 : vector<4x8x32xf32> to vector<32x32xf32>
    %32 = arith.truncf %31 : vector<32x32xf32> to vector<32x32xbf16>
    %c0_12 = arith.constant 0 : index
    %c0_13 = arith.constant 0 : index
    %33 = vector.load %arg5[%c0_12, %c0_13] : memref<32x32xbf16, #tpu.memory_space<vmem>>, vector<32x32xbf16>
    %cst_14 = arith.constant dense<0.000000e+00> : vector<32x32xf32>
    %34 = tpu.matmul %32, %33, %cst_14 {dimension_numbers = #tpu.dot_dimension_numbers<[1], [0], [0], [1], [0, 0, 1, 1], [], []>} : vector<32x32xbf16>, vector<32x32xbf16>, vector<32x32xf32> -> vector<32x32xf32>
    %35 = vector.shape_cast %34 : vector<32x32xf32> to vector<4x8x32xf32>
    %c0_15 = arith.constant 0 : index
    %c0_16 = arith.constant 0 : index
    %36 = vector.load %arg6[%c0_15, %c0_16] : memref<32x32xbf16, #tpu.memory_space<vmem>>, vector<32x32xbf16>
    %cst_17 = arith.constant dense<0.000000e+00> : vector<32x32xf32>
    %37 = tpu.matmul %32, %36, %cst_17 {dimension_numbers = #tpu.dot_dimension_numbers<[1], [0], [0], [1], [0, 0, 1, 1], [], []>} : vector<32x32xbf16>, vector<32x32xbf16>, vector<32x32xf32> -> vector<32x32xf32>
    %38 = vector.shape_cast %37 : vector<32x32xf32> to vector<4x8x32xf32>
    %c0_18 = arith.constant 0 : index
    %c0_19 = arith.constant 0 : index
    %39 = vector.load %arg7[%c0_18, %c0_19] : memref<32x32xbf16, #tpu.memory_space<vmem>>, vector<32x32xbf16>
    %cst_20 = arith.constant dense<0.000000e+00> : vector<32x32xf32>
    %40 = tpu.matmul %32, %39, %cst_20 {dimension_numbers = #tpu.dot_dimension_numbers<[1], [0], [0], [1], [0, 0, 1, 1], [], []>} : vector<32x32xbf16>, vector<32x32xbf16>, vector<32x32xf32> -> vector<32x32xf32>
    %41 = vector.shape_cast %40 : vector<32x32xf32> to vector<4x8x32xf32>
    %42 = arith.truncf %35 : vector<4x8x32xf32> to vector<4x8x32xbf16>
    %43 = arith.truncf %38 : vector<4x8x32xf32> to vector<4x8x32xbf16>
    "tpu.trace_start"() <{level = 10 : i32, message = "nqd,nkd->nqk"}> : () -> ()
    %cst_21 = arith.constant dense<0.000000e+00> : vector<4x8x8xf32>
    %44 = tpu.matmul %42, %43, %cst_21 {dimension_numbers = #tpu.dot_dimension_numbers<[2], [2], [1], [1], [0, 0, 0, 1, 1, 1], [0], [0]>} : vector<4x8x32xbf16>, vector<4x8x32xbf16>, vector<4x8x8xf32> -> vector<4x8x8xf32>
    "tpu.trace_stop"() : () -> ()
    %cst_22 = arith.constant dense<0xFF800000> : vector<4x8xf32>
    %45 = vector.multi_reduction <maximumf>, %44, %cst_22 [2] : vector<4x8x8xf32> to vector<4x8xf32>
    %46 = vector.shape_cast %45 : vector<4x8xf32> to vector<4x8x1xf32>
    %47 = vector.broadcast %46 : vector<4x8x1xf32> to vector<4x8x8xf32>
    %48 = arith.subf %44, %47 : vector<4x8x8xf32>
    %49 = math.exp %48 : vector<4x8x8xf32>
    %cst_23 = arith.constant dense<0.000000e+00> : vector<4x8xf32>
    %50 = vector.multi_reduction <add>, %49, %cst_23 [2] : vector<4x8x8xf32> to vector<4x8xf32>
    %51 = vector.shape_cast %50 : vector<4x8xf32> to vector<4x8x1xf32>
    %52 = tpu.reciprocal %51 : vector<4x8x1xf32> -> vector<4x8x1xf32>
    %53 = vector.broadcast %52 : vector<4x8x1xf32> to vector<4x8x8xf32>
    %54 = arith.mulf %49, %53 : vector<4x8x8xf32>
    %55 = arith.truncf %54 : vector<4x8x8xf32> to vector<4x8x8xbf16>
    %56 = arith.truncf %41 : vector<4x8x32xf32> to vector<4x8x32xbf16>
    "tpu.trace_start"() <{level = 10 : i32, message = "nqk,nkd->nqd"}> : () -> ()
    %cst_24 = arith.constant dense<0.000000e+00> : vector<4x8x32xf32>
    %57 = tpu.matmul %55, %56, %cst_24 {dimension_numbers = #tpu.dot_dimension_numbers<[2], [1], [1], [2], [0, 0, 0, 1, 1, 2], [0], [0]>} : vector<4x8x8xbf16>, vector<4x8x32xbf16>, vector<4x8x32xf32> -> vector<4x8x32xf32>
    "tpu.trace_stop"() : () -> ()
    %58 = vector.shape_cast %57 : vector<4x8x32xf32> to vector<32x32xf32>
    %59 = arith.truncf %58 : vector<32x32xf32> to vector<32x32xbf16>
    %c0_25 = arith.constant 0 : index
    %c0_26 = arith.constant 0 : index
    %60 = vector.load %arg8[%c0_25, %c0_26] : memref<32x32xbf16, #tpu.memory_space<vmem>>, vector<32x32xbf16>
    %cst_27 = arith.constant dense<0.000000e+00> : vector<32x32xf32>
    %61 = tpu.matmul %59, %60, %cst_27 {dimension_numbers = #tpu.dot_dimension_numbers<[1], [0], [0], [1], [0, 0, 1, 1], [], []>} : vector<32x32xbf16>, vector<32x32xbf16>, vector<32x32xf32> -> vector<32x32xf32>
    %c0_28 = arith.constant 0 : index
    %c0_29 = arith.constant 0 : index
    %62 = vector.load %arg9[%c0_28, %c0_29] : memref<1x32xf32, #tpu.memory_space<vmem>>, vector<1x32xf32>
    %63 = vector.broadcast %62 : vector<1x32xf32> to vector<32x32xf32>
    %64 = arith.addf %61, %63 : vector<32x32xf32>
    %c0_30 = arith.constant 0 : index
    %c0_31 = arith.constant 0 : index
    %65 = vector.load %arg10[%c0_30, %c0_31] : memref<1x32xf32, #tpu.memory_space<vmem>>, vector<1x32xf32>
    %c0_32 = arith.constant 0 : index
    %c0_33 = arith.constant 0 : index
    %66 = vector.load %arg11[%c0_32, %c0_33] : memref<1x32xf32, #tpu.memory_space<vmem>>, vector<1x32xf32>
    %cst_34 = arith.constant dense<0.000000e+00> : vector<32xf32>
    %67 = vector.multi_reduction <add>, %64, %cst_34 [1] : vector<32x32xf32> to vector<32xf32>
    %68 = vector.shape_cast %67 : vector<32xf32> to vector<32x1xf32>
    %cst_35 = arith.constant 3.200000e+01 : f32
    %69 = vector.broadcast %cst_35 : f32 to vector<32x1xf32>
    %70 = arith.divf %68, %69 : vector<32x1xf32>
    %71 = vector.broadcast %70 : vector<32x1xf32> to vector<32x32xf32>
    %72 = arith.subf %64, %71 : vector<32x32xf32>
    %73 = arith.mulf %72, %72 : vector<32x32xf32>
    %cst_36 = arith.constant dense<0.000000e+00> : vector<32xf32>
    %74 = vector.multi_reduction <add>, %73, %cst_36 [1] : vector<32x32xf32> to vector<32xf32>
    %75 = vector.shape_cast %74 : vector<32xf32> to vector<32x1xf32>
    %cst_37 = arith.constant 3.200000e+01 : f32
    %76 = vector.broadcast %cst_37 : f32 to vector<32x1xf32>
    %77 = arith.divf %75, %76 : vector<32x1xf32>
    %78 = vector.broadcast %70 : vector<32x1xf32> to vector<32x32xf32>
    %79 = arith.subf %64, %78 : vector<32x32xf32>
    %cst_38 = arith.constant 9.99999974E-6 : f32
    %80 = vector.broadcast %cst_38 : f32 to vector<32x1xf32>
    %81 = arith.addf %77, %80 : vector<32x1xf32>
    %82 = math.rsqrt %81 : vector<32x1xf32>
    %83 = vector.broadcast %82 : vector<32x1xf32> to vector<32x32xf32>
    %84 = arith.mulf %79, %83 : vector<32x32xf32>
    %85 = vector.broadcast %65 : vector<1x32xf32> to vector<32x32xf32>
    %86 = arith.mulf %84, %85 : vector<32x32xf32>
    %87 = vector.broadcast %66 : vector<1x32xf32> to vector<32x32xf32>
    %88 = arith.addf %86, %87 : vector<32x32xf32>
    %89 = arith.truncf %88 : vector<32x32xf32> to vector<32x32xbf16>
    %c0_39 = arith.constant 0 : index
    %c0_40 = arith.constant 0 : index
    %90 = vector.load %arg12[%c0_39, %c0_40] : memref<32x64xbf16, #tpu.memory_space<vmem>>, vector<32x64xbf16>
    %cst_41 = arith.constant dense<0.000000e+00> : vector<32x64xf32>
    %91 = tpu.matmul %89, %90, %cst_41 {dimension_numbers = #tpu.dot_dimension_numbers<[1], [0], [0], [1], [0, 0, 1, 1], [], []>} : vector<32x32xbf16>, vector<32x64xbf16>, vector<32x64xf32> -> vector<32x64xf32>
    %c0_42 = arith.constant 0 : index
    %c0_43 = arith.constant 0 : index
    %92 = vector.load %arg13[%c0_42, %c0_43] : memref<1x64xf32, #tpu.memory_space<vmem>>, vector<1x64xf32>
    %93 = vector.broadcast %92 : vector<1x64xf32> to vector<32x64xf32>
    %94 = arith.addf %91, %93 : vector<32x64xf32>
    %cst_44 = arith.constant 0.000000e+00 : f32
    %95 = vector.broadcast %cst_44 : f32 to vector<32x64xf32>
    %96 = arith.cmpf oge, %94, %95 : vector<32x64xf32>
    %cst_45 = arith.constant 0.00999999977 : f32
    %97 = vector.broadcast %cst_45 : f32 to vector<32x64xf32>
    %98 = arith.mulf %97, %94 : vector<32x64xf32>
    %99 = arith.select %96, %94, %98 : vector<32x64xi1>, vector<32x64xf32>
    %c0_46 = arith.constant 0 : index
    %c0_47 = arith.constant 0 : index
    %100 = vector.load %arg14[%c0_46, %c0_47] : memref<64x2xf32, #tpu.memory_space<vmem>>, vector<64x2xf32>
    %cst_48 = arith.constant dense<0.000000e+00> : vector<32x2xf32>
    %101 = tpu.matmul %99, %100, %cst_48 {dimension_numbers = #tpu.dot_dimension_numbers<[1], [0], [0], [1], [0, 0, 1, 1], [], []>} : vector<32x64xf32>, vector<64x2xf32>, vector<32x2xf32> -> vector<32x2xf32>
    %c0_49 = arith.constant 0 : index
    %c0_50 = arith.constant 0 : index
    %102 = vector.load %arg15[%c0_49, %c0_50] : memref<1x2xf32, #tpu.memory_space<vmem>>, vector<1x2xf32>
    %103 = vector.broadcast %102 : vector<1x2xf32> to vector<32x2xf32>
    %104 = arith.addf %101, %103 : vector<32x2xf32>
    %105 = vector.shape_cast %104 : vector<32x2xf32> to vector<4x8x2xf32>
    %c0_51 = arith.constant 0 : index
    %c0_52 = arith.constant 0 : index
    %c0_53 = arith.constant 0 : index
    %106 = vector.load %arg16[%c0_51, %c0_52, %c0_53] : memref<4x8x2xf32, #tpu.memory_space<vmem>>, vector<4x8x2xf32>
    tpu.vector_store %arg16[%c0_51, %c0_52, %c0_53], %105 {strides = array<i32>} : memref<4x8x2xf32, #tpu.memory_space<vmem>>, vector<4x8x2xf32>,
    return
  }
  func.func @transform_0(%arg0: i32) -> (i32, i32, i32) {
    %c0_i32 = arith.constant 0 : i32
    %c0_i32_0 = arith.constant 0 : i32
    %c0_i32_1 = arith.constant 0 : i32
    return %arg0, %c0_i32, %c0_i32_0 : i32, i32, i32
  }
  func.func @transform_1(%arg0: i32) -> (i32, i32) {
    %c0_i32 = arith.constant 0 : i32
    %c0_i32_0 = arith.constant 0 : i32
    %c0_i32_1 = arith.constant 0 : i32
    return %c0_i32, %c0_i32_0 : i32, i32
  }
  func.func @transform_2(%arg0: i32) -> (i32, i32) {
    %c0_i32 = arith.constant 0 : i32
    %c0_i32_0 = arith.constant 0 : i32
    %c0_i32_1 = arith.constant 0 : i32
    return %c0_i32, %c0_i32_0 : i32, i32
  }
  func.func @transform_3(%arg0: i32) -> (i32, i32) {
    %c0_i32 = arith.constant 0 : i32
    %c0_i32_0 = arith.constant 0 : i32
    %c0_i32_1 = arith.constant 0 : i32
    return %c0_i32, %c0_i32_0 : i32, i32
  }
  func.func @transform_4(%arg0: i32) -> (i32, i32) {
    %c0_i32 = arith.constant 0 : i32
    %c0_i32_0 = arith.constant 0 : i32
    %c0_i32_1 = arith.constant 0 : i32
    return %c0_i32, %c0_i32_0 : i32, i32
  }
  func.func @transform_5(%arg0: i32) -> (i32, i32) {
    %c0_i32 = arith.constant 0 : i32
    %c0_i32_0 = arith.constant 0 : i32
    %c0_i32_1 = arith.constant 0 : i32
    return %c0_i32, %c0_i32_0 : i32, i32
  }
  func.func @transform_6(%arg0: i32) -> (i32, i32) {
    %c0_i32 = arith.constant 0 : i32
    %c0_i32_0 = arith.constant 0 : i32
    %c0_i32_1 = arith.constant 0 : i32
    return %c0_i32, %c0_i32_0 : i32, i32
  }
  func.func @transform_7(%arg0: i32) -> (i32, i32) {
    %c0_i32 = arith.constant 0 : i32
    %c0_i32_0 = arith.constant 0 : i32
    %c0_i32_1 = arith.constant 0 : i32
    return %c0_i32, %c0_i32_0 : i32, i32
  }
  func.func @transform_8(%arg0: i32) -> (i32, i32) {
    %c0_i32 = arith.constant 0 : i32
    %c0_i32_0 = arith.constant 0 : i32
    %c0_i32_1 = arith.constant 0 : i32
    return %c0_i32, %c0_i32_0 : i32, i32
  }
  func.func @transform_9(%arg0: i32) -> (i32, i32) {
    %c0_i32 = arith.constant 0 : i32
    %c0_i32_0 = arith.constant 0 : i32
    %c0_i32_1 = arith.constant 0 : i32
    return %c0_i32, %c0_i32_0 : i32, i32
  }
  func.func @transform_10(%arg0: i32) -> (i32, i32) {
    %c0_i32 = arith.constant 0 : i32
    %c0_i32_0 = arith.constant 0 : i32
    %c0_i32_1 = arith.constant 0 : i32
    return %c0_i32, %c0_i32_0 : i32, i32
  }
  func.func @transform_11(%arg0: i32) -> (i32, i32) {
    %c0_i32 = arith.constant 0 : i32
    %c0_i32_0 = arith.constant 0 : i32
    %c0_i32_1 = arith.constant 0 : i32
    return %c0_i32, %c0_i32_0 : i32, i32
  }
  func.func @transform_12(%arg0: i32) -> (i32, i32) {
    %c0_i32 = arith.constant 0 : i32
    %c0_i32_0 = arith.constant 0 : i32
    %c0_i32_1 = arith.constant 0 : i32
    return %c0_i32, %c0_i32_0 : i32, i32
  }
  func.func @transform_13(%arg0: i32) -> (i32, i32) {
    %c0_i32 = arith.constant 0 : i32
    %c0_i32_0 = arith.constant 0 : i32
    %c0_i32_1 = arith.constant 0 : i32
    return %c0_i32, %c0_i32_0 : i32, i32
  }
  func.func @transform_14(%arg0: i32) -> (i32, i32) {
    %c0_i32 = arith.constant 0 : i32
    %c0_i32_0 = arith.constant 0 : i32
    %c0_i32_1 = arith.constant 0 : i32
    return %c0_i32, %c0_i32_0 : i32, i32
  }
  func.func @transform_15(%arg0: i32) -> (i32, i32, i32) {
    %c0_i32 = arith.constant 0 : i32
    %c0_i32_0 = arith.constant 0 : i32
    %c0_i32_1 = arith.constant 0 : i32
    return %arg0, %c0_i32, %c0_i32_0 : i32, i32, i32
  }
}

</mosaic_0001>

<bundles_post_ra>
// kernel: tpu_custom_call.1
= control target key start
LH: loop header
LB: loop body
LE: loop exit
PB: predicated region body
PF: predicated region fallthrough
CT: control target
= control target key end

     0   :  { %20 = vsyncpa [#allocation3], 0  ;;  %s2859_s0 = inlined_call_operand.vmem [shape: f32[8,8,32], index: 0, kind: input, shape index: {}]   ;;  %s2860_s1 = inlined_call_operand.hbm [shape: f32[8,32], index: 1, kind: input, shape index: {}]   ;;  %s2861_s2 = inlined_call_operand.hbm [shape: f32[1,32], index: 2, kind: input, shape index: {}]   ;;  %s2862_s3 = inlined_call_operand.hbm [shape: f32[1,32], index: 3, kind: input, shape index: {}]   ;;  %s2863_s4 = inlined_call_operand.hbm [shape: bf16[32,32], index: 4, kind: input, shape index: {}]   ;;  %s2864_s5 = inlined_call_operand.hbm [shape: bf16[32,32], index: 5, kind: input, shape index: {}]   ;;  %s2865_s6 = inlined_call_operand.hbm [shape: bf16[32,32], index: 6, kind: input, shape index: {}]   ;;  %s2866_s7 = inlined_call_operand.hbm [shape: bf16[32,32], index: 7, kind: input, shape index: {}]   ;;  %s2867_s8 = inlined_call_operand.hbm [shape: f32[1,32], index: 8, kind: input, shape index: {}]   ;;  %s2868_s9 = inlined_call_operand.hbm [shape: f32[1,32], index: 9, kind: input, shape index: {}]   ;;  %s2869_s10 = inlined_call_operand.vmem [shape: f32[1,32], index: 10, kind: input, shape index: {}]   ;;  %s2870_s11 = inlined_call_operand.vmem [shape: bf16[32,64], index: 11, kind: input, shape index: {}]   ;;  %s2871_s12 = inlined_call_operand.vmem [shape: f32[1,64], index: 12, kind: input, shape index: {}]   ;;  %s2872_s13 = inlined_call_operand.vmem [shape: f32[64,2], index: 13, kind: input, shape index: {}]   ;;  %s2873_s14 = inlined_call_operand.vmem [shape: f32[1,2], index: 14, kind: input, shape index: {}]   ;;  %s2874_s15 = inlined_call_operand.vmem [shape: f32[8,8,2], index: 15, kind: output, shape index: {}]  }
   0x1   :  { %21 = vsyncpa [#allocation5], 0 }
   0x2   :  { %22 = vsyncpa [#allocation8], 0 }
   0x3   :  { %23 = vsyncpa [#allocation11], 0 }
   0x4   :  { %24 = vsyncpa [#allocation14], 0  ;;  %s2572_s18 = smov 0  }
   0x5 LB: > { %s2479_s19 = smov [#allocation4]   ;;  %s2875_s21 = sadd.s32 4294967295, %s2477_s18   ;;  %s2477_s18 = sphi %s2572_s18, %s30_s18  }
   0x6   : > { %s405_s20 = sshll.u32 %s2479_s19, 4  ;;  %p1848_p0 = scmp.ge.s32.totalorder %s2477_s18, 1  ;;  %s406_s20 = int_to_ptr.vmem [resolvable:$true] %s405_s20 }
   0x7   : > { %p381_p1 = scmp.lt.s32.totalorder %s2477_s18, 3  ;;  %p2582_p2 = scmp.eq.s32.totalorder %s2875_s21, 0 }
   0x8   : > { %s2480_s24 = smov [#allocation7]   ;;  %s2481_s27 = smov [#allocation10]  }
   0x9   : > { %s2882_s22 = scalar_select %p2582_p2, 1, 0 }
   0xa   : > { %p2586_p3 = pnand %p1848_p0, %p381_p1  ;;  %s426_s25 = sshll.u32 %s2480_s24, 4  ;;  %s2592_s25 = int_to_ptr.vmem [resolvable:$true] %s426_s25 }
   0xb   : > { %s452_s28 = sshll.u32 %s2481_s27, 4  ;;  %s2482_s29 = smov [#allocation13]   ;;  %s2600_s28 = int_to_ptr.vmem [resolvable:$true] %s452_s28 }
   0xc   : > { %p2108_p4 = pneg %p2586_p3  ;;  %s2602_s30 = sshll.u32 %s2482_s29, 4  ;;  %s480_s30 = int_to_ptr.vmem [resolvable:$true] %s2602_s30 }
   0xd   : > { %s2228_s17 = scalar_lea.vmem %s406_s20, 16  ;;  %s2235_s19 = scalar_lea.vmem %s406_s20, 32 }
   0xe   : > { %p2596_p5 = pnand %p2582_p2, %p2108_p4  ;;  %p2229_p7 = scmp.ne.s32.totalorder %s406_s20, %s2228_s17 }
   0xf   : > { %p2236_p10 = scmp.lt.s32.totalorder %s406_s20, %s406_s20  ;;  %p2237_p11 = scmp.lt.s32.totalorder %s2235_s19, %s2228_s17 }
  0x10   : > { %p2606_p6 = pneg %p2596_p5 }
  0x11   : > { %p2238_p12 = por %p2237_p11, %p2236_p10 }
  0x12   : > { %p2231_p8 = pnand %p2229_p7, %p2606_p6 }
  0x14   : > { %p2232_p9 = pneg %p2231_p8 }
  0x16   : > { %p2239_p13 = pnand %p2238_p12, %p2232_p9 }
  0x18   : > { %2242 = shalt.err (!%p2239_p13)
}
  0x19   : > { %2114 = dma.hbm_to_vmem [thread:$0]  (!%p2596_p5), %s2861_s2, 16, %s406_s20, [#allocation5]  }
  0x1a   : > { %s2254_s29 = scalar_lea.vmem %s2592_s25, 256  ;;  %p2262_p7 = scmp.lt.s32.totalorder %s2592_s25, %s2592_s25 }
  0x1b   : > { %p2255_p0 = scmp.ne.s32.totalorder %s2592_s25, %s2254_s29  ;;  %p2263_p8 = scmp.lt.s32.totalorder %s2254_s29, %s2254_s29 }
  0x1d   : > { %p2257_p1 = pnand %p2255_p0, %p2606_p6  ;;  %p2264_p9 = por %p2263_p8, %p2262_p7 }
  0x1f   : > { %p2258_p4 = pneg %p2257_p1 }
  0x21   : > { %p2265_p10 = pnand %p2264_p9, %p2258_p4 }
  0x23   : > { %2268 = shalt.err (!%p2265_p10)
}
  0x24   : > { %s2876_s17 = smov 64   ;;  %s2878_s19 = smov 4  }
  0x25   : > { %2120 = dma.hbm_to_vmem [thread:$0]  (!%p2596_p5), %s2863_s4, 256, %s2592_s25, [#allocation8], %s2876_s17, %s2876_s17, %s2878_s19  }
  0x26   : > { %s2280_s27 = scalar_lea.vmem %s2600_s28, 256  ;;  %p2288_p0 = scmp.lt.s32.totalorder %s2600_s28, %s2600_s28 }
  0x27   : > { %p2281_p11 = scmp.ne.s32.totalorder %s2600_s28, %s2280_s27  ;;  %p2289_p1 = scmp.lt.s32.totalorder %s2280_s27, %s2280_s27 }
  0x29   : > { %p2283_p12 = pnand %p2281_p11, %p2606_p6  ;;  %p2290_p4 = por %p2289_p1, %p2288_p0 }
  0x2b   : > { %p2284_p13 = pneg %p2283_p12 }
  0x2d   : > { %p2291_p7 = pnand %p2290_p4, %p2284_p13 }
  0x2f   : > { %2294 = shalt.err (!%p2291_p7)
}
  0x30   : > { %2126 = dma.hbm_to_vmem [thread:$0]  (!%p2596_p5), %s2865_s6, 256, %s2600_s28, [#allocation11], %s2876_s17, %s2876_s17, %s2878_s19  }
  0x31   : > { %s2306_s25 = scalar_lea.vmem %s480_s30, 16  ;;  %s2313_s24 = scalar_lea.vmem %s480_s30, 32 }
  0x32   : > { %p2307_p8 = scmp.ne.s32.totalorder %s480_s30, %s2306_s25  ;;  %p2314_p11 = scmp.lt.s32.totalorder %s480_s30, %s480_s30 }
  0x33   : > { %p2315_p12 = scmp.lt.s32.totalorder %s2313_s24, %s2306_s25 }
  0x34   : > { %p2309_p9 = pnand %p2307_p8, %p2606_p6 }
  0x35   : > { %p2316_p13 = por %p2315_p12, %p2314_p11 }
  0x36   : > { %p2310_p10 = pneg %p2309_p9 }
  0x38   : > { %p2317_p0 = pnand %p2316_p13, %p2310_p10 }
  0x3a   : > { %2320 = shalt.err (!%p2317_p0)
}
  0x3b   : > { %2132 = dma.hbm_to_vmem [thread:$0]  (!%p2596_p5), %s2867_s8, 16, %s480_s30, [#allocation14]  }
  0x3c   : > { %s2485_s28 = smov [#allocation2]   ;;  %s2486_s20 = smov [#allocation6]  }
  0x3d   : > { %s394_s29 = sshll.u32 %s2485_s28, 4  ;;  %s416_s17 = sshll.u32 %s2486_s20, 4  ;;  %s395_s29 = int_to_ptr.vmem [resolvable:$true] %s394_s29  ;;  %s417_s17 = int_to_ptr.vmem [resolvable:$true] %s416_s17 }
  0x3e   : > { %s2332_s19 = scalar_lea.vmem %s395_s29, 128  ;;  %p2340_p8 = scmp.lt.s32.totalorder %s395_s29, %s395_s29 }
  0x3f   : > { %p2333_p1 = scmp.ne.s32.totalorder %s395_s29, %s2332_s19  ;;  %p2341_p9 = scmp.lt.s32.totalorder %s2332_s19, %s2332_s19 }
  0x41   : > { %p2335_p4 = pnand %p2333_p1, %p2606_p6  ;;  %p2342_p10 = por %p2341_p9, %p2340_p8 }
  0x43   : > { %p2336_p7 = pneg %p2335_p4 }
  0x45   : > { %p2343_p11 = pnand %p2342_p10, %p2336_p7 }
  0x47   : > { %2346 = shalt.err (!%p2343_p11)
}
  0x48   : > { %2111 = dma.hbm_to_vmem [thread:$0]  (!%p2596_p5), %s2860_s1, 128, %s395_s29, [#allocation3]  }
  0x49   : > { %s2358_s30 = scalar_lea.vmem %s417_s17, 16  ;;  %s2365_s24 = scalar_lea.vmem %s417_s17, 32 }
  0x4a   : > { %p2359_p12 = scmp.ne.s32.totalorder %s417_s17, %s2358_s30  ;;  %p2366_p1 = scmp.lt.s32.totalorder %s417_s17, %s417_s17 }
  0x4b   : > { %p2367_p4 = scmp.lt.s32.totalorder %s2365_s24, %s2358_s30 }
  0x4c   : > { %p2361_p13 = pnand %p2359_p12, %p2606_p6 }
  0x4d   : > { %p2368_p2 = por %p2367_p4, %p2366_p1 }
  0x4e   : > { %p2362_p0 = pneg %p2361_p13 }
  0x50   : > { %p2369_p8 = pnand %p2368_p2, %p2362_p0 }
  0x52   : > { %2372 = shalt.err (!%p2369_p8)
}
  0x53   : > { %2117 = dma.hbm_to_vmem [thread:$0]  (!%p2596_p5), %s2862_s3, 16, %s417_s17, [#allocation5]  }
  0x54   : > { %s2487_s28 = smov [#allocation9]   ;;  %s2488_s20 = smov [#allocation12]  }
  0x55   : > { %s439_s29 = sshll.u32 %s2487_s28, 4  ;;  %s465_s21 = sshll.u32 %s2488_s20, 4  ;;  %s440_s29 = int_to_ptr.vmem [resolvable:$true] %s439_s29  ;;  %s466_s21 = int_to_ptr.vmem [resolvable:$true] %s465_s21 }
  0x56   : > { %s2384_s25 = scalar_lea.vmem %s440_s29, 256  ;;  %p2392_p11 = scmp.lt.s32.totalorder %s440_s29, %s440_s29 }
  0x57   : > { %p2385_p7 = scmp.ne.s32.totalorder %s440_s29, %s2384_s25  ;;  %p2393_p2 = scmp.lt.s32.totalorder %s2384_s25, %s2384_s25 }
  0x59   : > { %p2387_p9 = pnand %p2385_p7, %p2606_p6  ;;  %p2394_p12 = por %p2393_p2, %p2392_p11 }
  0x5b   : > { %p2388_p10 = pneg %p2387_p9 }
  0x5d   : > { %p2395_p13 = pnand %p2394_p12, %p2388_p10 }
  0x5f   : > { %2398 = shalt.err (!%p2395_p13)
}
  0x60   : > { %s2886_s30 = smov 4   ;;  %s2887_s24 = smov 64  }
  0x61   : > { %2123 = dma.hbm_to_vmem [thread:$0]  (!%p2596_p5), %s2864_s5, 256, %s440_s29, [#allocation8], %s2887_s24, %s2887_s24, %s2886_s30  }
  0x62   : > { %s2410_s27 = scalar_lea.vmem %s466_s21, 256  ;;  %p2418_p8 = scmp.lt.s32.totalorder %s466_s21, %s466_s21 }
  0x63   : > { %p2411_p0 = scmp.ne.s32.totalorder %s466_s21, %s2410_s27  ;;  %p2419_p7 = scmp.lt.s32.totalorder %s2410_s27, %s2410_s27 }
  0x65   : > { %p2413_p1 = pnand %p2411_p0, %p2606_p6  ;;  %p2420_p9 = por %p2419_p7, %p2418_p8 }
  0x67   : > { %p2414_p4 = pneg %p2413_p1 }
  0x69   : > { %p2421_p10 = pnand %p2420_p9, %p2414_p4 }
  0x6b   : > { %2424 = shalt.err (!%p2421_p10)
}
  0x6c   : > { %2129 = dma.hbm_to_vmem [thread:$0]  (!%p2596_p5), %s2866_s7, 256, %s466_s21, [#allocation11], %s2887_s24, %s2887_s24, %s2886_s30  }
  0x6d   : > { %s2489_s29 = smov [#allocation15]  }
  0x6e   : > { %s490_s25 = sshll.u32 %s2489_s29, 4  ;;  %s491_s25 = int_to_ptr.vmem [resolvable:$true] %s490_s25 }
  0x6f   : > { %s2436_s17 = scalar_lea.vmem %s491_s25, 16  ;;  %s2443_s19 = scalar_lea.vmem %s491_s25, 32 }
  0x70   : > { %p2437_p11 = scmp.ne.s32.totalorder %s491_s25, %s2436_s17  ;;  %p2444_p13 = scmp.lt.s32.totalorder %s491_s25, %s491_s25 }
  0x71   : > { %p2445_p0 = scmp.lt.s32.totalorder %s2443_s19, %s2436_s17 }
  0x72   : > { %p2439_p2 = pnand %p2437_p11, %p2606_p6 }
  0x73   : > { %p2446_p1 = por %p2445_p0, %p2444_p13 }
  0x74   : > { %p2440_p12 = pneg %p2439_p2 }
  0x76   : > { %p2447_p4 = pnand %p2446_p1, %p2440_p12 }
  0x78   : > { %2450 = shalt.err (!%p2447_p4)
}
  0x79   : > { %2135 = dma.hbm_to_vmem [thread:$0]  (!%p2596_p5), %s2868_s9, 16, %s491_s25, [#allocation14]  }
  0x7a   : > { %527 = sbr.rel (%p2586_p3) target bundleno = 2304 (0x900), region = 80  ;;  %p2888_p8 = scmp.ne.s32.totalorder (!%p2586_p3), %s2882_s22, 0 }
  0x7f   : > { %2456 = dma.done.wait (%p2888_p8), [#allocation3], 128  }
  0x80   : > { %2458 = vsyncadd (%p2888_p8), [#allocation3], 4294967168 }
  0x81   : > { %2460 = dma.done.wait (%p2888_p8), [#allocation5], 32  }
  0x82   : > { %2462 = vsyncadd (%p2888_p8), [#allocation5], 4294967264 }
  0x83   : > { %2464 = dma.done.wait (%p2888_p8), [#allocation8], 512  }
  0x84   : > { %2466 = vsyncadd (%p2888_p8), [#allocation8], 4294966784 }
  0x85   : > { %2468 = dma.done.wait (%p2888_p8), [#allocation11], 512  }
  0x86   : > { %2470 = vsyncadd (%p2888_p8), [#allocation11], 4294966784 }
  0x87   : > { %2472 = dma.done.wait (%p2888_p8), [#allocation14], 32  }
  0x88   : > { %2474 = vsyncadd (%p2888_p8), [#allocation14], 4294967264  ;;  %s2889_s23 = sadd.s32 4294967295, %s2477_s18   ;;  %v624_v1 = vld [vmem:[#allocation2] sm:$0xff]  ;;  %vm631_vm0 = vcmask 261120   ;;  %v2175_v33 = vld [vmem:[#allocation7 + $0x8] sm:$0xff]  }
  0x89   : > { %s1869_s26 = sshll.u32 %s2889_s23, 2  ;;  %v2176_v34 = vld [vmem:[#allocation9 + $0x8] sm:$0xff]   ;;  %v2177_v35 = vld [vmem:[#allocation7] sm:$0xff]   ;;  %1962 = vmatprep.subr.bf16.mxu0 %v2175_v33  ;;  %v2178_v36 = vld [vmem:[#allocation9] sm:$0xff]   ;;  %vm2491_vm1 = vmmov 0   ;;  %vm1156_vm2 = vcmask 1043456  }
  0x8a   : > { %p608_p3 = scmp.lt.s32.totalorder %s1869_s26, 7  ;;  %1970 = vmatprep.subr.bf16.mxu1 %v2176_v34  ;;  %1963 = vmatpush3.bf16.msra.mxu0 %v2175_v33  ;;  %v2179_v37 = vld [vmem:[#allocation10 + $0x8] sm:$0xff]   ;;  %v1873_v52 = vld [vmem:[#allocation4] ss:$0 sm:$0xff]  ;;  %v1874_v57 = vld [vmem:[#allocation6] ss:$0 sm:$0xff] }
  0x8b   : > { %1971 = vmatpush3.bf16.msra.mxu1 %v2176_v34  ;;  %1964 = vmatprep.subr.bf16.mxu0 %v2177_v35  ;;  %vm1100_vm3 = vcmask 64512   ;;  %vm1599_vm5 = vcmask 523264   ;;  %vm1697_vm9 = vcmask 15360  }
  0x8c   : > { %s2891_s26 = smov (!%p608_p3, %s1869_s26), 7  ;;  %1972 = vmatprep.subr.bf16.mxu1 %v2178_v36 }
  0x8d   : > { %s1870_s16 = sshll.u32 %s2891_s26, 3 }
  0x8e   : > { %s611_s24 = scalar_lea.vmem %s2859_s0, %s1870_s16  ;;  %1965 = vmatpush3.bf16.msra.mxu0 %v2177_v35  ;;  %s617_s17 = scalar_lea.vmem %s2874_s15, %s1870_s16 }
  0x8f   : > { %v620_v0 = vld [vmem:[%s611_s24] sm:$0xff]  ;;  %v622_v2 = vld [vmem:[%s611_s24 + $0x10] sm:$0xff]  ;;  %v621_v5 = vld [vmem:[%s611_s24 + $0x8] sm:$0xff]  ;;  %1973 = vmatpush3.bf16.msra.mxu1 %v2178_v36  ;;  %1978 = vmatprep.subr.bf16.mxu0 %v2179_v37 }
  0x90   : > { %v625_v3 = vadd.f32 %v624_v1, %v620_v0  ;;  %v627_v4 = vadd.f32 %v624_v1, %v622_v2  ;;  %v623_v6 = vld [vmem:[%s611_s24 + $0x18] sm:$0xff]  ;;  %v626_v7 = vadd.f32 %v624_v1, %v621_v5 }
  0x91   : > { %v628_v8 = vadd.f32 %v624_v1, %v623_v6  ;;  %v2180_v6 = vld [vmem:[#allocation10] sm:$0xff]  }
  0x92   : > { %v632_v9 = vsel %vm631_vm0, %v625_v3, 0.0  ;;  %v638_v10 = vsel %vm631_vm0, %v627_v4, 0.0  ;;  %v635_v11 = vsel %vm631_vm0, %v626_v7, 0.0 }
  0x93   : > { %633 = vadd.xlane.f32.xlu0 %v632_v9  ;;  %639 = vadd.xlane.f32.xlu1 %v638_v10  ;;  %v641_v12 = vsel %vm631_vm0, %v628_v8, 0.0 }
  0x97   : > { %636 = vadd.xlane.f32.xlu0 %v635_v11  ;;  %642 = vadd.xlane.f32.xlu1 %v641_v12 }
 0x11c   : > { %v634_v13 = vpop.xlane.xlu0 %633  ;;  %v640_v14 = vpop.xlane.xlu1 %639 }
 0x11d   : > { %v645_v15 = vmul.f32 0.03125, %v634_v13  ;;  %v647_v16 = vmul.f32 0.03125, %v640_v14 }
 0x11f   : > { %v649_v17 = vsub.f32 %v625_v3, %v645_v15  ;;  %v651_v18 = vsub.f32 %v627_v4, %v647_v16 }
 0x120   : > { %v637_v19 = vpop.xlane.xlu0 %636  ;;  %v643_v20 = vpop.xlane.xlu1 %642 }
 0x121   : > { %v646_v21 = vmul.f32 0.03125, %v637_v19  ;;  %v648_v22 = vmul.f32 0.03125, %v643_v20  ;;  %v653_v23 = vmul.f32 %v649_v17, %v649_v17  ;;  %v655_v24 = vmul.f32 %v651_v18, %v651_v18 }
 0x123   : > { %v650_v25 = vsub.f32 %v626_v7, %v646_v21  ;;  %v652_v26 = vsub.f32 %v628_v8, %v648_v22  ;;  %v657_v27 = vsel %vm631_vm0, %v653_v23, 0.0  ;;  %v663_v28 = vsel %vm631_vm0, %v655_v24, 0.0 }
 0x124   : > { %658 = vadd.xlane.f32.xlu0 %v657_v27  ;;  %v2490_v7 = vmov 0.0  }
 0x125   : > { %v654_v29 = vmul.f32 %v650_v25, %v650_v25  ;;  %v656_v30 = vmul.f32 %v652_v26, %v652_v26  ;;  %1986 = vmatprep.subr.bf16.mxu1 %v2490_v7 }
 0x127   : > { %v660_v31 = vsel %vm631_vm0, %v654_v29, 0.0  ;;  %v666_v32 = vsel %vm631_vm0, %v656_v30, 0.0 }
 0x128   : > { %664 = vadd.xlane.f32.xlu0 %v663_v28  ;;  %661 = vadd.xlane.f32.xlu1 %v660_v31 }
 0x12c   : > { %667 = vadd.xlane.f32.xlu1 %v666_v32 }
 0x1ad   : > { %v659_v38 = vpop.xlane.xlu0 %658 }
 0x1ae   : > { %v669_v39 = vmul.f32 0.03125, %v659_v38 }
 0x1b0   : > { %v673_v40 = vadd.f32 1e-05, %v669_v39 }
 0x1b1   : > { %v662_v41 = vpop.xlane.xlu1 %661  ;;  %v665_v42 = vpop.xlane.xlu0 %664 }
 0x1b2   : > { %2185 = vrsqrt.f32 %v673_v40  ;;  %v670_v43 = vmul.f32 0.03125, %v662_v41  ;;  %v671_v44 = vmul.f32 0.03125, %v665_v42 }
 0x1b4   : > { %v674_v45 = vadd.f32 1e-05, %v670_v43  ;;  %v675_v46 = vadd.f32 1e-05, %v671_v44 }
 0x1b5   : > { %v668_v47 = vpop.xlane.xlu1 %667 }
 0x1b6   : > { %2187 = vrsqrt.f32 %v674_v45  ;;  %v672_v48 = vmul.f32 0.03125, %v668_v47 }
 0x1b7   : > { %2189 = vrsqrt.f32 %v675_v46 }
 0x1b8   : > { %v676_v49 = vadd.f32 1e-05, %v672_v48 }
 0x1ba   : > { %2191 = vrsqrt.f32 %v676_v49 }
 0x1bf   : > { %v2186_v50 = vpop.eup %2185 }
 0x1c0   : > { %v681_v51 = vmul.f32 %v2186_v50, %v649_v17 }
 0x1c2   : > { %v691_v56 = vmul.f32 %v1873_v52, %v681_v51 }
 0x1c3   : > { %v2188_v53 = vpop.eup %2187 }
 0x1c4   : > { %v2190_v54 = vpop.eup %2189  ;;  %v682_v55 = vmul.f32 %v2188_v53, %v650_v25  ;;  %v701_v61 = vadd.f32 %v1874_v57, %v691_v56 }
 0x1c5   : > { %v683_v58 = vmul.f32 %v2190_v54, %v651_v18 }
 0x1c6   : > { %v692_v59 = vmul.f32 %v1873_v52, %v682_v55 }
 0x1c7   : > { %v2192_v60 = vpop.eup %2191  ;;  %v693_v0 = vmul.f32 %v1873_v52, %v683_v58 }
 0x1c8   : > { %v702_v62 = vadd.f32 %v1874_v57, %v692_v59  ;;  %v684_v63 = vmul.f32 %v2192_v60, %v652_v26 }
 0x1c9   : > { %v703_v3 = vadd.f32 %v1874_v57, %v693_v0 }
 0x1ca   : > { %v705_v1 = vpack.c.bf16 %v702_v62, %v701_v61  ;;  %v694_v2 = vmul.f32 %v1873_v52, %v684_v63 }
 0x1cc   : > { %1966 = vmatprep.mubr.msk.bf16.mxu0 %vm631_vm0, %v705_v1  ;;  %1974 = vmatprep.mubr.msk.bf16.mxu1 %vm631_vm0, %v705_v1  ;;  %v704_v4 = vadd.f32 %v1874_v57, %v694_v2 }
 0x1ce   : > { %v706_v5 = vpack.c.bf16 %v704_v4, %v703_v3 }
 0x1d0   : > { %1967 = vmatmul.mubr.msk.bf16.vlgmr.msra.gmra.mxu0 %vm631_vm0, %v706_v5  ;;  %1975 = vmatmul.mubr.msk.bf16.vlgmr.msra.gmra.mxu1 %vm631_vm0, %v706_v5 }
 0x1d1   : > { %1979 = vmatpush3.bf16.msra.mxu0 %v2179_v37  ;;  %1982 = vmatprep.mubr.msk.bf16.mxu0 %vm631_vm0, %v705_v1 }
 0x1d2   : > { %1980 = vmatprep.subr.bf16.mxu0 %v2180_v6  ;;  %1988 = vmatprep.mubr.msk.bf16.mxu1 %vm2491_vm1, %v2490_v7 }
 0x1d5   : > { %1981 = vmatpush3.bf16.msra.mxu0 %v2180_v6 }
 0x1d6   : > { %1992 = vmatprep.subr.bf16.mxu0 %v2490_v7 }
 0x1d8   : > { %1983 = vmatmul.mubr.msk.bf16.vlgmr.msra.gmra.mxu0 %vm631_vm0, %v706_v5 }
 0x1d9   : > { %1994 = vmatprep.mubr.msk.bf16.mxu0 %vm2491_vm1, %v2490_v7 }
 0x290   : > { %v1968_v8 = vpop.f32.mrf.mxu0  ;;  %v1976_v9 = vpop.f32.mrf.mxu1 }
 0x291   : > { %v914_v20 = vpack.c.bf16 %v1976_v9, %v1976_v9  ;;  %v910_v35 = vpack.c.bf16 %v1968_v8, %v1968_v8 }
 0x292   : > { %v763_v10 = vpop.f32.mrf.mxu0  ;;  %v828_v11 = vpop.f32.mrf.mxu1 }
 0x293   : > { %v912_v12 = vpack.c.bf16 %v828_v11, %v828_v11  ;;  %v908_v24 = vpack.c.bf16 %v763_v10, %v763_v10  ;;  %v1012_v27 = vsel %vm631_vm0, %v914_v20, 0 }
 0x294   : > { %v1969_v13 = vpop.f32.mrf.mxu0  ;;  %v1977_v14 = vpop.f32.mrf.mxu1 }
 0x295   : > { %v920_v15 = vsel %vm631_vm0, %v912_v12, 0  ;;  %v915_v28 = vpack.c.bf16 %v1977_v14, %v1977_v14  ;;  %v911_v38 = vpack.c.bf16 %v1969_v13, %v1969_v13 }
 0x296   : > { %v766_v16 = vpop.f32.mrf.mxu0  ;;  %v831_v17 = vpop.f32.mrf.mxu1  ;;  %1987 = vmatpush3.bf16.xpose.msra.mxu1 %v920_v15 }
 0x297   : > { %v913_v18 = vpack.c.bf16 %v831_v17, %v831_v17  ;;  %1998 = vmatprep.subr.bf16.mxu1 %v2490_v7  ;;  %v909_v30 = vpack.c.bf16 %v766_v16, %v766_v16  ;;  %v1058_v32 = vsel %vm631_vm0, %v915_v28, 0 }
 0x298   : > { %v1984_v19 = vpop.f32.mrf.mxu0 }
 0x299   : > { %v966_v21 = vsel %vm631_vm0, %v913_v18, 0  ;;  %v1151_v22 = vpack.c.bf16 %v1984_v19, %v1984_v19 }
 0x29a   : > { %v893_v23 = vpop.f32.mrf.mxu0  ;;  %1993 = vmatpush3.bf16.xpose.msra.mxu0 %v966_v21 }
 0x29b   : > { %v2752_v25 = vsel %vm1156_vm2, %v1151_v22, 0  ;;  %2004 = vmatprep.subr.bf16.mxu0 %v2490_v7  ;;  %v1149_v33 = vpack.c.bf16 %v893_v23, %v893_v23 }
 0x29c   : > { %v1985_v26 = vpop.f32.mrf.mxu0 }
 0x29d   : > { %v1152_v29 = vpack.c.bf16 %v1985_v26, %v1985_v26  ;;  %1989 = vmatmul.mubr.msk.bf16.vlgmr.msra.gmra.mxu1 %vm631_vm0, %v908_v24  ;;  %v1158_v36 = vsel %vm1156_vm2, %v1149_v33, 0 }
 0x29e   : > { %1999 = vmatpush3.bf16.xpose.msra.mxu1 %v1012_v27  ;;  %2000 = vmatprep.mubr.msk.bf16.mxu1 %vm2491_vm1, %v2490_v7  ;;  %v896_v34 = vpop.f32.mrf.mxu0 }
 0x29f   : > { %v2760_v31 = vsel %vm1156_vm2, %v1152_v29, 0  ;;  %2010 = vmatprep.subr.bf16.mxu1 %v2490_v7  ;;  %v1150_v37 = vpack.c.bf16 %v896_v34, %v896_v34 }
 0x2a1   : > { %1995 = vmatmul.mubr.msk.bf16.vlgmr.msra.gmra.mxu0 %vm631_vm0, %v909_v30  ;;  %v1204_v39 = vsel %vm1156_vm2, %v1150_v37, 0 }
 0x2a2   : > { %2005 = vmatpush3.bf16.xpose.msra.mxu0 %v1058_v32  ;;  %2006 = vmatprep.mubr.msk.bf16.mxu0 %vm2491_vm1, %v2490_v7 }
 0x2a3   : > { %2016 = vmatprep.subr.bf16.mxu0 %v2490_v7 }
 0x2a5   : > { %2001 = vmatmul.mubr.msk.bf16.vlgmr.msra.gmra.mxu1 %vm631_vm0, %v910_v35  ;;  %v2182_v35 = vld [vmem:[#allocation12] sm:$0xff]  }
 0x2a6   : > { %2011 = vmatpush3.bf16.msra.mxu1 %v1158_v36  ;;  %2012 = vmatprep.mubr.msk.bf16.mxu1 %vm2491_vm1, %v2490_v7 }
 0x2a7   : > { %2022 = vmatprep.subr.bf16.mxu1 %v2490_v7 }
 0x2a9   : > { %2007 = vmatmul.mubr.msk.bf16.vlgmr.msra.gmra.mxu0 %vm631_vm0, %v911_v38 }
 0x2aa   : > { %2017 = vmatpush3.bf16.msra.mxu0 %v1204_v39  ;;  %2018 = vmatprep.mubr.msk.bf16.mxu0 %vm2491_vm1, %v2490_v7 }
 0x2ab   : > { %2028 = vmatprep.subr.bf16.mxu0 %v2490_v7 }
 0x35d   : > { %v956_v40 = vpop.f32.mrf.mxu1 }
 0x35e   : > { %v1101_v41 = vsel %vm1100_vm3, %v956_v40, -inf }
 0x35f   : > { %1102 = vmax.xlane.f32.xlu0 %v1101_v41  ;;  %v1990_v42 = vpop.f32.mrf.mxu1 }
 0x361   : > { %v959_v43 = vpop.f32.mrf.mxu1  ;;  %v1002_v44 = vpop.f32.mrf.mxu0 }
 0x362   : > { %v1104_v45 = vsel %vm1100_vm3, %v1002_v44, -inf }
 0x363   : > { %v1991_v46 = vpop.f32.mrf.mxu1  ;;  %1105 = vmax.xlane.f32.xlu1 %v1104_v45  ;;  %v1996_v47 = vpop.f32.mrf.mxu0 }
 0x365   : > { %v1005_v48 = vpop.f32.mrf.mxu0  ;;  %v1048_v49 = vpop.f32.mrf.mxu1 }
 0x366   : > { %v1107_v50 = vsel %vm1100_vm3, %v1048_v49, -inf }
 0x367   : > { %1108 = vmax.xlane.f32.xlu0 %v1107_v50  ;;  %v1997_v51 = vpop.f32.mrf.mxu0  ;;  %v2002_v52 = vpop.f32.mrf.mxu1 }
 0x369   : > { %v1051_v53 = vpop.f32.mrf.mxu1  ;;  %v1094_v54 = vpop.f32.mrf.mxu0 }
 0x36a   : > { %v1110_v55 = vsel %vm1100_vm3, %v1094_v54, -inf  ;;  %v1895_v53 = vld [vmem:[#allocation13] ss:$0 sm:$0xff] }
 0x36b   : > { %v2003_v56 = vpop.f32.mrf.mxu1  ;;  %1111 = vmax.xlane.f32.xlu1 %v1110_v55  ;;  %v2008_v57 = vpop.f32.mrf.mxu0 }
 0x36d   : > { %v1097_v58 = vpop.f32.mrf.mxu0 }
 0x36f   : > { %v2009_v59 = vpop.f32.mrf.mxu0 }
 0x3e8   : > { %v1103_v60 = vpop.xlane.xlu0 %1102 }
 0x3e9   : > { %v1113_v61 = vsub.f32 %v956_v40, %v1103_v60 }
 0x3eb   : > { %v1117_v62 = vmul.f32 1.442695, %v1113_v61 }
 0x3ec   : > { %v1106_v63 = vpop.xlane.xlu1 %1105 }
 0x3ed   : > { %2193 = vpow2.f32 %v1117_v62  ;;  %v1114_v0 = vsub.f32 %v1002_v44, %v1106_v63 }
 0x3ef   : > { %v1119_v1 = vmul.f32 1.442695, %v1114_v0 }
 0x3f0   : > { %v1109_v2 = vpop.xlane.xlu0 %1108 }
 0x3f1   : > { %2195 = vpow2.f32 %v1119_v1  ;;  %v1115_v3 = vsub.f32 %v1048_v49, %v1109_v2 }
 0x3f3   : > { %v1121_v4 = vmul.f32 1.442695, %v1115_v3 }
 0x3f4   : > { %v1112_v5 = vpop.xlane.xlu1 %1111 }
 0x3f5   : > { %2197 = vpow2.f32 %v1121_v4  ;;  %v1116_v6 = vsub.f32 %v1094_v54, %v1112_v5 }
 0x3f7   : > { %v1123_v8 = vmul.f32 1.442695, %v1116_v6 }
 0x3f9   : > { %2199 = vpow2.f32 %v1123_v8 }
 0x3fa   : > { %v2194_v9 = vpop.eup %2193 }
 0x3fb   : > { %v1125_v10 = vsel %vm1100_vm3, %v2194_v9, 0.0 }
 0x3fc   : > { %1126 = vadd.xlane.f32.xlu0 %v1125_v10 }
 0x3fe   : > { %v2196_v11 = vpop.eup %2195 }
 0x3ff   : > { %v1128_v12 = vsel %vm1100_vm3, %v2196_v11, 0.0 }
 0x400   : > { %1129 = vadd.xlane.f32.xlu1 %v1128_v12 }
 0x402   : > { %v2198_v13 = vpop.eup %2197 }
 0x403   : > { %v1131_v14 = vsel %vm1100_vm3, %v2198_v13, 0.0 }
 0x404   : > { %1132 = vadd.xlane.f32.xlu0 %v1131_v14 }
 0x406   : > { %v2200_v15 = vpop.eup %2199 }
 0x407   : > { %v1134_v16 = vsel %vm1100_vm3, %v2200_v15, 0.0 }
 0x408   : > { %1135 = vadd.xlane.f32.xlu1 %v1134_v16 }
 0x485   : > { %v1127_v17 = vpop.xlane.xlu0 %1126 }
 0x486   : > { %2201 = vrcp.f32 %v1127_v17 }
 0x489   : > { %v1130_v18 = vpop.xlane.xlu1 %1129 }
 0x48a   : > { %2203 = vrcp.f32 %v1130_v18 }
 0x48d   : > { %v1133_v19 = vpop.xlane.xlu0 %1132 }
 0x48e   : > { %2205 = vrcp.f32 %v1133_v19 }
 0x491   : > { %v1136_v20 = vpop.xlane.xlu1 %1135 }
 0x492   : > { %2207 = vrcp.f32 %v1136_v20 }
 0x493   : > { %v2202_v21 = vpop.eup %2201 }
 0x494   : > { %v1141_v22 = vmul.f32 %v2202_v21, %v2194_v9 }
 0x496   : > { %v1145_v23 = vpack.c.bf16 %v1141_v22, %v1141_v22  ;;  %v2183_v22 = vld [vmem:[%s2870_s11 + $0x8] sm:$0xff]  }
 0x497   : > { %v2204_v24 = vpop.eup %2203 }
 0x498   : > { %2013 = vmatmul.mubr.msk.bf16.vlgmr.msra.gmra.mxu1 %vm1100_vm3, %v1145_v23  ;;  %v1142_v26 = vmul.f32 %v2204_v24, %v2196_v11  ;;  %v2184_v23 = vld [vmem:[%s2870_s11] sm:$0xff]   ;;  %v1591_v24 = vld [vmem:[%s2872_s13 + $0x38] sm:$0xff] }
 0x499   : > { %2023 = vmatpush3.bf16.msra.mxu1 %v2752_v25  ;;  %2024 = vmatprep.mubr.msk.bf16.mxu1 %vm2491_vm1, %v2490_v7  ;;  %v2181_v25 = vld [vmem:[#allocation12 + $0x8] sm:$0xff]  }
 0x49a   : > { %v1146_v27 = vpack.c.bf16 %v1142_v26, %v1142_v26  ;;  %2034 = vmatprep.subr.bf16.mxu1 %v2181_v25  ;;  %v1590_v26 = vld [vmem:[%s2872_s13 + $0x30] sm:$0xff] }
 0x49b   : > { %v2206_v28 = vpop.eup %2205 }
 0x49c   : > { %2019 = vmatmul.mubr.msk.bf16.vlgmr.msra.gmra.mxu0 %vm1100_vm3, %v1146_v27  ;;  %v1143_v29 = vmul.f32 %v2206_v28, %v2198_v13 }
 0x49d   : > { %2029 = vmatpush3.bf16.msra.mxu0 %v2760_v31  ;;  %2030 = vmatprep.mubr.msk.bf16.mxu0 %vm2491_vm1, %v2490_v7 }
 0x49e   : > { %v1147_v30 = vpack.c.bf16 %v1143_v29, %v1143_v29  ;;  %2042 = vmatprep.subr.bf16.mxu0 %v2183_v22 }
 0x49f   : > { %v2208_v32 = vpop.eup %2207 }
 0x4a0   : > { %2025 = vmatmul.mubr.msk.bf16.vlgmr.msra.gmra.mxu1 %vm1100_vm3, %v1147_v30  ;;  %v1144_v33 = vmul.f32 %v2208_v32, %v2200_v15 }
 0x4a1   : > { %2035 = vmatpush3.bf16.msra.mxu1 %v2181_v25 }
 0x4a2   : > { %v1148_v34 = vpack.c.bf16 %v1144_v33, %v1144_v33  ;;  %2036 = vmatprep.subr.bf16.mxu1 %v2182_v35 }
 0x4a4   : > { %2031 = vmatmul.mubr.msk.bf16.vlgmr.msra.gmra.mxu0 %vm1100_vm3, %v1148_v34 }
 0x4a5   : > { %2037 = vmatpush3.bf16.msra.mxu1 %v2182_v35  ;;  %2043 = vmatpush3.bf16.msra.mxu0 %v2183_v22 }
 0x4a6   : > { %2044 = vmatprep.subr.bf16.mxu0 %v2184_v23  ;;  %2050 = vmatprep.subr.mxu1 %v1591_v24 }
 0x4a9   : > { %2045 = vmatpush3.bf16.msra.mxu0 %v2184_v23 }
 0x558   : > { %v1194_v36 = vpop.f32.mrf.mxu1 }
 0x55a   : > { %v2014_v37 = vpop.f32.mrf.mxu1 }
 0x55c   : > { %v1197_v31 = vpop.f32.mrf.mxu1  ;;  %v1240_v38 = vpop.f32.mrf.mxu0 }
 0x55d   : > { %v1338_v39 = vpack.c.bf16 %v1240_v38, %v1194_v36 }
 0x55e   : > { %v2015_v7 = vpop.f32.mrf.mxu1  ;;  %v2020_v40 = vpop.f32.mrf.mxu0 }
 0x55f   : > { %2038 = vmatprep.mubr.msk.bf16.mxu1 %vm631_vm0, %v1338_v39  ;;  %v1900_v7 = vld [vmem:[#allocation15] ss:$0 sm:$0xff] }
 0x560   : > { %v1243_v41 = vpop.f32.mrf.mxu0  ;;  %v1286_v42 = vpop.f32.mrf.mxu1 }
 0x562   : > { %v2021_v43 = vpop.f32.mrf.mxu0  ;;  %v2026_v44 = vpop.f32.mrf.mxu1 }
 0x564   : > { %v1289_v45 = vpop.f32.mrf.mxu1  ;;  %v1332_v46 = vpop.f32.mrf.mxu0 }
 0x565   : > { %v1339_v47 = vpack.c.bf16 %v1332_v46, %v1286_v42  ;;  %v1901_v45 = vld [vmem:[%s2869_s10] ss:$0 sm:$0xff] }
 0x566   : > { %v2027_v48 = vpop.f32.mrf.mxu1  ;;  %v2032_v49 = vpop.f32.mrf.mxu0 }
 0x567   : > { %2039 = vmatmul.mubr.msk.bf16.vlgmr.msra.gmra.mxu1 %vm631_vm0, %v1339_v47 }
 0x568   : > { %v1335_v50 = vpop.f32.mrf.mxu0  ;;  %2051 = vmatpush3.msra.mxu1 %v1591_v24 }
 0x569   : > { %2052 = vmatprep.subr.mxu1 %v1590_v26 }
 0x56a   : > { %v2033_v51 = vpop.f32.mrf.mxu0  ;;  %2053 = vmatpush3.msra.mxu1 %v1590_v26 }
 0x627   : > { %v2040_v52 = vpop.f32.mrf.mxu1 }
 0x628   : > { %v1412_v57 = vadd.f32 %v2040_v52, %v1895_v53 }
 0x629   : > { %v1403_v54 = vpop.f32.mrf.mxu1 }
 0x62a   : > { %v1404_v55 = vadd.f32 %v1895_v53, %v1403_v54  ;;  %v1426_v63 = vsel %vm631_vm0, %v1412_v57, 0.0 }
 0x62b   : > { %v2041_v56 = vpop.f32.mrf.mxu1 }
 0x62c   : > { %v1420_v58 = vsel %vm631_vm0, %v1404_v55, 0.0  ;;  %v1415_v61 = vadd.f32 %v2041_v56, %v1895_v53 }
 0x62d   : > { %v1406_v59 = vpop.f32.mrf.mxu1  ;;  %1421 = vadd.xlane.f32.xlu0 %v1420_v58  ;;  %v1588_v58 = vld [vmem:[%s2872_s13 + $0x20] sm:$0xff] }
 0x62e   : > { %v1407_v60 = vadd.f32 %v1895_v53, %v1406_v59  ;;  %v1429_v0 = vsel %vm631_vm0, %v1415_v61, 0.0  ;;  %v1587_v59 = vld [vmem:[%s2872_s13 + $0x18] sm:$0xff] }
 0x630   : > { %v1423_v62 = vsel %vm631_vm0, %v1407_v60, 0.0 }
 0x631   : > { %1424 = vadd.xlane.f32.xlu1 %v1423_v62  ;;  %1427 = vadd.xlane.f32.xlu0 %v1426_v63  ;;  %v1584_v62 = vld [vmem:[%s2872_s13] sm:$0xff] }
 0x635   : > { %1430 = vadd.xlane.f32.xlu1 %v1429_v0  ;;  %v1902_v0 = vld [vmem:[%s2871_s12] ss:$0 sm:$0xff] }
 0x6b6   : > { %v1422_v1 = vpop.xlane.xlu0 %1421 }
 0x6b7   : > { %v1432_v2 = vmul.f32 0.03125, %v1422_v1 }
 0x6b9   : > { %v1436_v3 = vsub.f32 %v1404_v55, %v1432_v2 }
 0x6ba   : > { %v1425_v4 = vpop.xlane.xlu1 %1424  ;;  %v1428_v5 = vpop.xlane.xlu0 %1427 }
 0x6bb   : > { %v1433_v6 = vmul.f32 0.03125, %v1425_v4  ;;  %v1434_v8 = vmul.f32 0.03125, %v1428_v5  ;;  %v1440_v9 = vmul.f32 %v1436_v3, %v1436_v3 }
 0x6bd   : > { %v1437_v10 = vsub.f32 %v1407_v60, %v1433_v6  ;;  %v1438_v11 = vsub.f32 %v1412_v57, %v1434_v8  ;;  %v1444_v12 = vsel %vm631_vm0, %v1440_v9, 0.0  ;;  %v1589_v57 = vld [vmem:[%s2872_s13 + $0x28] sm:$0xff]  ;;  %v1586_v60 = vld [vmem:[%s2872_s13 + $0x10] sm:$0xff] }
 0x6be   : > { %v1431_v13 = vpop.xlane.xlu1 %1430  ;;  %1445 = vadd.xlane.f32.xlu0 %v1444_v12  ;;  %2054 = vmatprep.subr.mxu1 %v1589_v57 }
 0x6bf   : > { %v1435_v14 = vmul.f32 0.03125, %v1431_v13  ;;  %v1441_v15 = vmul.f32 %v1437_v10, %v1437_v10  ;;  %v1442_v16 = vmul.f32 %v1438_v11, %v1438_v11  ;;  %2055 = vmatpush3.msra.mxu1 %v1589_v57 }
 0x6c0   : > { %2056 = vmatprep.subr.mxu1 %v1588_v58 }
 0x6c1   : > { %v1439_v17 = vsub.f32 %v1415_v61, %v1435_v14  ;;  %v1447_v18 = vsel %vm631_vm0, %v1441_v15, 0.0  ;;  %v1450_v19 = vsel %vm631_vm0, %v1442_v16, 0.0  ;;  %2057 = vmatpush3.msra.mxu1 %v1588_v58  ;;  %v1585_v61 = vld [vmem:[%s2872_s13 + $0x8] sm:$0xff] }
 0x6c2   : > { %1448 = vadd.xlane.f32.xlu1 %v1447_v18  ;;  %1451 = vadd.xlane.f32.xlu0 %v1450_v19  ;;  %v1907_v18 = vld [vmem:[%s2873_s14] ss:$0 sm:$0xff] }
 0x6c3   : > { %v1443_v20 = vmul.f32 %v1439_v17, %v1439_v17  ;;  %2058 = vmatprep.subr.mxu1 %v1587_v59 }
 0x6c4   : > { %2059 = vmatpush3.msra.mxu1 %v1587_v59 }
 0x6c5   : > { %v1453_v21 = vsel %vm631_vm0, %v1443_v20, 0.0  ;;  %2060 = vmatprep.subr.mxu1 %v1586_v60 }
 0x6c6   : > { %1454 = vadd.xlane.f32.xlu1 %v1453_v21  ;;  %2061 = vmatpush3.msra.mxu1 %v1586_v60 }
 0x6c7   : > { %2062 = vmatprep.subr.mxu1 %v1585_v61 }
 0x6c8   : > { %2063 = vmatpush3.msra.mxu1 %v1585_v61 }
 0x6c9   : > { %2064 = vmatprep.subr.mxu1 %v1584_v62 }
 0x6ca   : > { %2065 = vmatpush3.msra.mxu1 %v1584_v62 }
 0x747   : > { %v1446_v27 = vpop.xlane.xlu0 %1445 }
 0x748   : > { %v1456_v28 = vmul.f32 0.03125, %v1446_v27 }
 0x74a   : > { %v1460_v29 = vadd.f32 1e-05, %v1456_v28 }
 0x74b   : > { %v1449_v30 = vpop.xlane.xlu1 %1448  ;;  %v1452_v32 = vpop.xlane.xlu0 %1451 }
 0x74c   : > { %2209 = vrsqrt.f32 %v1460_v29  ;;  %v1457_v33 = vmul.f32 0.03125, %v1449_v30  ;;  %v1458_v34 = vmul.f32 0.03125, %v1452_v32 }
 0x74e   : > { %v1461_v25 = vadd.f32 1e-05, %v1457_v33  ;;  %v1462_v35 = vadd.f32 1e-05, %v1458_v34 }
 0x74f   : > { %v1455_v36 = vpop.xlane.xlu1 %1454 }
 0x750   : > { %2211 = vrsqrt.f32 %v1461_v25  ;;  %v1459_v37 = vmul.f32 0.03125, %v1455_v36 }
 0x751   : > { %2213 = vrsqrt.f32 %v1462_v35 }
 0x752   : > { %v1463_v31 = vadd.f32 1e-05, %v1459_v37 }
 0x754   : > { %2215 = vrsqrt.f32 %v1463_v31 }
 0x759   : > { %v2210_v38 = vpop.eup %2209 }
 0x75a   : > { %v1468_v39 = vmul.f32 %v2210_v38, %v1436_v3 }
 0x75c   : > { %v1478_v43 = vmul.f32 %v1900_v7, %v1468_v39 }
 0x75d   : > { %v2212_v40 = vpop.eup %2211 }
 0x75e   : > { %v2214_v41 = vpop.eup %2213  ;;  %v1469_v42 = vmul.f32 %v2212_v40, %v1437_v10  ;;  %v1488_v49 = vadd.f32 %v1901_v45, %v1478_v43 }
 0x75f   : > { %v1470_v44 = vmul.f32 %v2214_v41, %v1438_v11 }
 0x760   : > { %v1479_v46 = vmul.f32 %v1900_v7, %v1469_v42 }
 0x761   : > { %v2216_v47 = vpop.eup %2215  ;;  %v1480_v51 = vmul.f32 %v1900_v7, %v1470_v44 }
 0x762   : > { %v1471_v48 = vmul.f32 %v2216_v47, %v1439_v17  ;;  %v1489_v50 = vadd.f32 %v1901_v45, %v1479_v46 }
 0x763   : > { %v1490_v54 = vadd.f32 %v1901_v45, %v1480_v51 }
 0x764   : > { %v1492_v52 = vpack.c.bf16 %v1489_v50, %v1488_v49  ;;  %v1481_v53 = vmul.f32 %v1900_v7, %v1471_v48 }
 0x766   : > { %2046 = vmatprep.mubr.msk.bf16.mxu0 %vm631_vm0, %v1492_v52  ;;  %v1491_v55 = vadd.f32 %v1901_v45, %v1481_v53 }
 0x768   : > { %v1493_v56 = vpack.c.bf16 %v1491_v55, %v1490_v54 }
 0x76a   : > { %2047 = vmatmul.mubr.msk.bf16.vlgmr.msra.gmra.mxu0 %vm631_vm0, %v1493_v56 }
 0x82a   : > { %v2048_v63 = vpop.f32.mrf.mxu0 }
 0x82b   : > { %v1566_v3 = vadd.f32 %v2048_v63, %v1902_v0 }
 0x82c   : > { %v1557_v1 = vpop.f32.mrf.mxu0 }
 0x82d   : > { %v1558_v2 = vadd.f32 %v1902_v0, %v1557_v1  ;;  %v1578_v11 = vmul.f32 0.01, %v1566_v3  ;;  %vm1574_vm6 = vcmp.ge.f32.partialorder %v1566_v3, 0.0 }
 0x82e   : > { %v2049_v4 = vpop.f32.mrf.mxu0 }
 0x82f   : > { %vm1572_vm4 = vcmp.ge.f32.partialorder %v1558_v2, 0.0  ;;  %v1576_v5 = vmul.f32 0.01, %v1558_v2  ;;  %v1569_v8 = vadd.f32 %v2049_v4, %v1902_v0  ;;  %v1582_v15 = vsel %vm1574_vm6, %v1566_v3, %v1578_v11 }
 0x830   : > { %v1560_v6 = vpop.f32.mrf.mxu0 }
 0x831   : > { %v1561_v9 = vadd.f32 %v1902_v0, %v1560_v6  ;;  %v1580_v10 = vsel %vm1572_vm4, %v1558_v2, %v1576_v5  ;;  %v1579_v13 = vmul.f32 0.01, %v1569_v8  ;;  %vm1575_vm8 = vcmp.ge.f32.partialorder %v1569_v8, 0.0 }
 0x832   : > { %2066 = vmatprep.mubr.msk.f32.mxu1 %vm1599_vm5, %v1580_v10 }
 0x833   : > { %vm1573_vm7 = vcmp.ge.f32.partialorder %v1561_v9, 0.0  ;;  %v1577_v12 = vmul.f32 0.01, %v1561_v9  ;;  %v1583_v16 = vsel %vm1575_vm8, %v1569_v8, %v1579_v13 }
 0x835   : > { %v1581_v14 = vsel %vm1573_vm7, %v1561_v9, %v1577_v12 }
 0x836   : > { %2067 = vmatmul.mubr.msk.f32.vlgmr.msra.gmra.mxu1 %vm1599_vm5, %v1581_v14 }
 0x837   : > { %2069 = vmatprep.mubr.msk.f32.mxu1 %vm1599_vm5, %v1582_v15 }
 0x83a   : > { %2070 = vmatmul.mubr.msk.f32.gmra.mxu1 %vm1599_vm5, %v1583_v16 }
 0x8f6   : > { %v2068_v17 = vpop.f32.mrf.mxu1 }
 0x8f7   : > { %v1684_v21 = vadd.f32 %v2068_v17, %v1907_v18 }
 0x8f8   : > { %v1678_v19 = vpop.f32.mrf.mxu1 }
 0x8f9   : > { %v1679_v20 = vadd.f32 %v1907_v18, %v1678_v19  ;;  %1699 = vst.msk [vmem:[%s617_s17 + $0x8] sm:$0xff] %vm1697_vm9, %v1684_v21 }
 0x8fa   : > { %v2071_v22 = vpop.f32.mrf.mxu1 }
 0x8fb   : > { %1698 = vst.msk [vmem:[%s617_s17] sm:$0xff] %vm1697_vm9, %v1679_v20  ;;  %v1694_v26 = vadd.f32 %v2071_v22, %v1907_v18 }
 0x8fc   : > { %v1688_v23 = vpop.f32.mrf.mxu1 }
 0x8fd   : > { %v1689_v24 = vadd.f32 %v1907_v18, %v1688_v23  ;;  %1701 = vst.msk [vmem:[%s617_s17 + $0x18] sm:$0xff] %vm1697_vm9, %v1694_v26 }
 0x8ff   : > { %1700 = vst.msk [vmem:[%s617_s17 + $0x10] sm:$0xff] %vm1697_vm9, %v1689_v24 }
 0x900 PF: > { %s30_s18 = sadd.s32 1, %s2477_s18  }
 0x901   : > { %p27_p5 = scmp.ge.s32.totalorder %s30_s18, 4  }
 0x903   :  { %29 = sbr.rel (!%p27_p5) target bundleno = 5 (0x5), region = 147 }
 0x908   :  { %1724 = vsyncpa [#allocation3], 1 }
 0x909   :  { %1726 = vsyncpa [#allocation3 + $0x1], 1 }
 0x90a   :  { %1727 = vsyncpa [#allocation5], 1 }
 0x90b   :  { %1728 = vsyncpa [#allocation8], 1 }
 0x90c   :  { %1729 = vsyncpa [#allocation11], 1 }
 0x90d   :  { %1730 = vsyncpa [#allocation14], 1 }

</bundles_post_ra>
